<compile_context>
chip_gen: v7x
topology: tpu7x:2x2x1
jax: 0.10.0
libtpu: 0.0.40
codegen_flags: <defaults>
</compile_context>

<pallas_src>
import jax
import jax.numpy as jnp
from jax.experimental import pallas as pl
from jax.experimental.pallas import tpu as pltpu


_LANE = 128
_SUBLANE = 8


def _round_up(x, m):
    return ((x + m - 1) // m) * m


# --------------------------------------------------------------------------
# Kernel
# --------------------------------------------------------------------------
def _discriminator_kernel(z_ref, w0_ref, b0_ref, w1_ref, b1_ref,
                          wd_ref, bd_ref, out_ref):
    # MLP hidden layer 0: Linear + ReLU  (MXU matmul, f32 accumulate)
    h = jnp.dot(z_ref[...], w0_ref[...], preferred_element_type=jnp.float32)
    h = jnp.maximum(h + b0_ref[...], 0.0)

    # MLP hidden layer 1: Linear + ReLU
    h = jnp.dot(h, w1_ref[...], preferred_element_type=jnp.float32)
    h = jnp.maximum(h + b1_ref[...], 0.0)

    # Final Linear(hidden, 1): a 1-wide MXU pass would waste a whole padded
    # MXU push, so do it as elementwise multiply (VPU) + lane reduction (XLU).
    wd = wd_ref[...].astype(jnp.float32)          # keep elementwise math f32
    logit = jnp.sum(h * wd, axis=-1, keepdims=True) + bd_ref[0, 0]

    # nn.Sigmoid (EUP)
    out_ref[...] = jax.nn.sigmoid(logit)


# --------------------------------------------------------------------------
# Tiling / VMEM sizing helpers
# --------------------------------------------------------------------------
def _choose_batch_tile(batch, max_tile, min_split_batch):
    """Pick the batch-tile size tm.

    * batch <  min_split_batch          -> one grid step (tm = batch)
    * min_split_batch <= batch <= cap   -> exactly two steps (v7x megacore)
    * batch >  cap                      -> cap-sized tiles (multiple of 8)
    """
    if batch <= max_tile:
        if batch >= min_split_batch:
            return _round_up((batch + 1) // 2, _SUBLANE)   # 2 grid steps
        return batch                                       # tm == full dim is legal
    return max_tile


def _vmem_budget_bytes(tm, in_dim, hidden, in_bytes):
    """Scoped-VMEM footprint for one grid step, including 128-lane padding."""
    lp = lambda d: _round_up(max(int(d), 1), _LANE)    # lane (minor) padding
    sp = lambda d: _round_up(max(int(d), 1), _SUBLANE)  # sublane padding
    f32 = 4
    z_tiles = 2 * tm * lp(in_dim) * in_bytes            # double-buffered input
    out_tiles = 2 * tm * lp(1) * f32                    # double-buffered output
    acts = 2 * tm * lp(hidden) * f32                    # live hidden activations
    weights = 2 * (sp(in_dim) * lp(hidden) * in_bytes   # w0
                   + sp(hidden) * lp(hidden) * in_bytes  # w1
                   + 2 * sp(1) * lp(hidden) * f32        # b0, b1
                   + sp(1) * lp(hidden) * in_bytes)      # wd
    return z_tiles + out_tiles + acts + weights


# --------------------------------------------------------------------------
# Wrapper
# --------------------------------------------------------------------------
def discriminator_forward(z, params, *, max_batch_tile=8192,
                          min_split_batch=2048, cast_inputs_bf16=False):
    """z: [B, in_dim] float32.

    params dict:
      w0: [in_dim, hidden]   b0: [1, hidden]
      w1: [hidden, hidden]   b1: [1, hidden]
      wd: [1, hidden]        bd: [1, 1]
    Weights are pre-transposed to [in, out] so the kernel does plain x @ W.
    """
    B, in_dim = z.shape
    hidden = params["w0"].shape[1]

    if cast_inputs_bf16:
        # Halve the B-scaling HBM stream (z) and the resident weights; keep
        # f32 accumulation + f32 elementwise math inside the kernel.
        z = z.astype(jnp.bfloat16)
        w0 = params["w0"].astype(jnp.bfloat16)
        w1 = params["w1"].astype(jnp.bfloat16)
        wd = params["wd"].astype(jnp.bfloat16)
        in_bytes = 2
    else:
        w0, w1, wd = params["w0"], params["w1"], params["wd"]
        in_bytes = 4
    b0 = params["b0"].astype(jnp.float32)
    b1 = params["b1"].astype(jnp.float32)
    bd = params["bd"].reshape(1, 1).astype(jnp.float32)

    # Batch tile: as large as possible (this kernel is step-overhead bound),
    # capped so double-buffered z/out tiles + lane-padded intermediates +
    # resident weights fit v7x's 64 MiB VMEM with headroom.
    max_tile = max((int(max_batch_tile) // _SUBLANE) * _SUBLANE, _SUBLANE)
    tm = _choose_batch_tile(B, max_tile, int(min_split_batch))
    grid = (pl.cdiv(B, tm),)

    # Scoped-VMEM ask derived from the actual footprint (+8 MiB margin),
    # never below 16 MiB; ~32 MiB at the default tm=8192 cap.
    vmem_limit = max(_vmem_budget_bytes(tm, in_dim, hidden, in_bytes)
                     + 8 * 1024 * 1024, 16 * 1024 * 1024)

    const = lambda i: (0, 0)   # weights/biases: same block every grid step

    out = pl.pallas_call(
        _discriminator_kernel,
        out_shape=jax.ShapeDtypeStruct((B, 1), jnp.float32),
        grid=grid,
        in_specs=[
            pl.BlockSpec((tm, in_dim), lambda i: (i, 0)),        # z (pipelined)
            pl.BlockSpec((in_dim, hidden), const),               # w0 (resident)
            pl.BlockSpec((1, hidden), const),                    # b0
            pl.BlockSpec((hidden, hidden), const),               # w1
            pl.BlockSpec((1, hidden), const),                    # b1
            pl.BlockSpec((1, hidden), const),                    # wd
            pl.BlockSpec(memory_space=pltpu.MemorySpace.SMEM),   # bd (scalar)
        ],
        out_specs=pl.BlockSpec((tm, 1), lambda i: (i, 0)),
        compiler_params=pltpu.CompilerParams(
            dimension_semantics=(pltpu.PARALLEL,),   # megacore sharding on v7x
            vmem_limit_bytes=int(vmem_limit),
        ),
    )(z, w0, b0, w1, b1, wd, bd)
    return out


# --------------------------------------------------------------------------
# Parameters + pure-JAX reference
# --------------------------------------------------------------------------
def init_params(key, in_dim, hidden_dim):
    """Deterministic synthetic parameter init (same shapes as the Linears)."""
    ks = jax.random.split(key, 6)

    def lin(kw, kb, fan_in, fan_out):
        w = jax.random.normal(kw, (fan_in, fan_out), jnp.float32) / jnp.sqrt(fan_in)
        b = jax.random.normal(kb, (1, fan_out), jnp.float32) * 0.01
        return w, b

    w0, b0 = lin(ks[0], ks[1], in_dim, hidden_dim)
    w1, b1 = lin(ks[2], ks[3], hidden_dim, hidden_dim)
    wd_t, bd = lin(ks[4], ks[5], hidden_dim, 1)           # Linear(hidden, 1)
    wd = wd_t.T                                           # store as [1, hidden]
    bd = bd.reshape(1, 1)
    return dict(w0=w0, b0=b0, w1=w1, b1=b1, wd=wd, bd=bd)


def reference_forward(z, p):
    """Plain-JAX reference for correctness check."""
    h = jnp.maximum(z @ p["w0"] + p["b0"], 0.0)
    h = jnp.maximum(h @ p["w1"] + p["b1"], 0.0)
    logit = h @ p["wd"].T + p["bd"]
    return jax.nn.sigmoid(logit)


if __name__ == "__main__":
    # Shapes consistent with the module:
    #   pins = {'dim': 16}, phidden = {'dim': 32, 'nlayers': 2}  -> out [B, 1]
    B, in_dim, hidden_dim = 8, 16, 32

    key = jax.random.PRNGKey(0)
    kz, kp, kz2 = jax.random.split(key, 3)
    z = jax.random.normal(kz, (B, in_dim), jnp.float32)
    params = init_params(kp, in_dim, hidden_dim)

    # Small batch: single grid step.
    out = discriminator_forward(z, params)
    jax.block_until_ready(out)
    ref = reference_forward(z, params)
    assert out.shape == (B, 1), "bad output shape"
    assert jnp.allclose(out, ref, atol=1e-5), "out mismatch (small batch)"

    # Larger odd batch: exercises the 2-step megacore split and a partial
    # last tile (B=3000 -> tm=1504, grid=(2,)).
    B2 = 3000
    z2 = jax.random.normal(kz2, (B2, in_dim), jnp.float32)
    out2 = discriminator_forward(z2, params)
    jax.block_until_ready(out2)
    ref2 = reference_forward(z2, params)
    assert out2.shape == (B2, 1), "bad output shape (gridded batch)"
    assert jnp.allclose(out2, ref2, atol=1e-5), "out mismatch (gridded batch)"

    # bf16 input-stream option (f32 accumulate / elementwise inside).
    out3 = discriminator_forward(z2[:256], params, cast_inputs_bf16=True)
    jax.block_until_ready(out3)
    ref3 = reference_forward(z2[:256], params)
    assert jnp.allclose(out3, ref3, atol=5e-2), "out mismatch (bf16 stream)"

    print("KERNEL_OK")
</pallas_src>

<mosaic_0001>
module attributes {stable_mosaic.version = 11 : i64} {
  func.func @_discriminator_kernel(%arg0: i32, %arg1: memref<8x16xf32, #tpu.memory_space<vmem>>, %arg2: memref<16x32xf32, #tpu.memory_space<vmem>>, %arg3: memref<1x32xf32, #tpu.memory_space<vmem>>, %arg4: memref<32x32xf32, #tpu.memory_space<vmem>>, %arg5: memref<1x32xf32, #tpu.memory_space<vmem>>, %arg6: memref<1x32xf32, #tpu.memory_space<vmem>>, %arg7: memref<1x1xf32, #tpu.memory_space<smem>>, %arg8: memref<8x1xf32, #tpu.memory_space<vmem>>) attributes {dimension_semantics = [#tpu.dimension_semantics<parallel>], iteration_bounds = array<i64: 1>, scalar_prefetch = 0 : i64, scratch_operands = 0 : i64, tpu.core_type = #tpu.core_type<tc>, window_params = [{transform_indices = @transform_0, window_bounds = array<i64: 8, 16>}, {pipeline_mode = #tpu.pipeline_mode<synchronous>, transform_indices = @transform_1, window_bounds = array<i64: 16, 32>}, {pipeline_mode = #tpu.pipeline_mode<synchronous>, transform_indices = @transform_2, window_bounds = array<i64: 1, 32>}, {pipeline_mode = #tpu.pipeline_mode<synchronous>, transform_indices = @transform_3, window_bounds = array<i64: 32, 32>}, {pipeline_mode = #tpu.pipeline_mode<synchronous>, transform_indices = @transform_4, window_bounds = array<i64: 1, 32>}, {pipeline_mode = #tpu.pipeline_mode<synchronous>, transform_indices = @transform_5, window_bounds = array<i64: 1, 32>}, {transform_indices = @transform_6, window_bounds = array<i64: 1, 1>}, {transform_indices = @transform_7, window_bounds = array<i64: 8, 1>}]} {
    %c0 = arith.constant 0 : index
    %c0_0 = arith.constant 0 : index
    %0 = vector.load %arg1[%c0, %c0_0] : memref<8x16xf32, #tpu.memory_space<vmem>>, vector<8x16xf32>
    %c0_1 = arith.constant 0 : index
    %c0_2 = arith.constant 0 : index
    %1 = vector.load %arg2[%c0_1, %c0_2] : memref<16x32xf32, #tpu.memory_space<vmem>>, vector<16x32xf32>
    %cst = arith.constant dense<0.000000e+00> : vector<8x32xf32>
    %2 = tpu.matmul %0, %1, %cst {dimension_numbers = #tpu.dot_dimension_numbers<[1], [0], [0], [1], [0, 0, 1, 1], [], []>} : vector<8x16xf32>, vector<16x32xf32>, vector<8x32xf32> -> vector<8x32xf32>
    %c0_3 = arith.constant 0 : index
    %c0_4 = arith.constant 0 : index
    %3 = vector.load %arg3[%c0_3, %c0_4] : memref<1x32xf32, #tpu.memory_space<vmem>>, vector<1x32xf32>
    %4 = vector.broadcast %3 : vector<1x32xf32> to vector<8x32xf32>
    %5 = arith.addf %2, %4 : vector<8x32xf32>
    %cst_5 = arith.constant 0.000000e+00 : f32
    %6 = vector.broadcast %cst_5 : f32 to vector<8x32xf32>
    %7 = arith.maximumf %5, %6 : vector<8x32xf32>
    %c0_6 = arith.constant 0 : index
    %c0_7 = arith.constant 0 : index
    %8 = vector.load %arg4[%c0_6, %c0_7] : memref<32x32xf32, #tpu.memory_space<vmem>>, vector<32x32xf32>
    %cst_8 = arith.constant dense<0.000000e+00> : vector<8x32xf32>
    %9 = tpu.matmul %7, %8, %cst_8 {dimension_numbers = #tpu.dot_dimension_numbers<[1], [0], [0], [1], [0, 0, 1, 1], [], []>} : vector<8x32xf32>, vector<32x32xf32>, vector<8x32xf32> -> vector<8x32xf32>
    %c0_9 = arith.constant 0 : index
    %c0_10 = arith.constant 0 : index
    %10 = vector.load %arg5[%c0_9, %c0_10] : memref<1x32xf32, #tpu.memory_space<vmem>>, vector<1x32xf32>
    %11 = vector.broadcast %10 : vector<1x32xf32> to vector<8x32xf32>
    %12 = arith.addf %9, %11 : vector<8x32xf32>
    %cst_11 = arith.constant 0.000000e+00 : f32
    %13 = vector.broadcast %cst_11 : f32 to vector<8x32xf32>
    %14 = arith.maximumf %12, %13 : vector<8x32xf32>
    %c0_12 = arith.constant 0 : index
    %c0_13 = arith.constant 0 : index
    %15 = vector.load %arg6[%c0_12, %c0_13] : memref<1x32xf32, #tpu.memory_space<vmem>>, vector<1x32xf32>
    %16 = vector.broadcast %15 : vector<1x32xf32> to vector<8x32xf32>
    %17 = arith.mulf %14, %16 : vector<8x32xf32>
    %cst_14 = arith.constant dense<0.000000e+00> : vector<8xf32>
    %18 = vector.multi_reduction <add>, %17, %cst_14 [1] : vector<8x32xf32> to vector<8xf32>
    %19 = vector.shape_cast %18 : vector<8xf32> to vector<8x1xf32>
    %c0_15 = arith.constant 0 : index
    %c0_16 = arith.constant 0 : index
    %20 = memref.load %arg7[%c0_15, %c0_16] : memref<1x1xf32, #tpu.memory_space<smem>>
    %21 = vector.broadcast %20 : f32 to vector<8x1xf32>
    %22 = arith.addf %19, %21 : vector<8x1xf32>
    %23 = arith.negf %22 : vector<8x1xf32>
    %24 = math.exp %23 : vector<8x1xf32>
    %cst_17 = arith.constant 1.000000e+00 : f32
    %25 = vector.broadcast %cst_17 : f32 to vector<8x1xf32>
    %26 = arith.addf %25, %24 : vector<8x1xf32>
    %27 = arith.divf %25, %26 : vector<8x1xf32>
    %c0_18 = arith.constant 0 : index
    %c0_19 = arith.constant 0 : index
    %28 = vector.load %arg8[%c0_18, %c0_19] : memref<8x1xf32, #tpu.memory_space<vmem>>, vector<8x1xf32>
    tpu.vector_store %arg8[%c0_18, %c0_19], %27 {strides = array<i32>} : memref<8x1xf32, #tpu.memory_space<vmem>>, vector<8x1xf32>,
    return
  }
  func.func @transform_0(%arg0: i32) -> (i32, i32) {
    %c0_i32 = arith.constant 0 : i32
    %c0_i32_0 = arith.constant 0 : i32
    return %arg0, %c0_i32 : i32, i32
  }
  func.func @transform_1(%arg0: i32) -> (i32, i32) {
    %c0_i32 = arith.constant 0 : i32
    %c0_i32_0 = arith.constant 0 : i32
    %c0_i32_1 = arith.constant 0 : i32
    return %c0_i32, %c0_i32_0 : i32, i32
  }
  func.func @transform_2(%arg0: i32) -> (i32, i32) {
    %c0_i32 = arith.constant 0 : i32
    %c0_i32_0 = arith.constant 0 : i32
    %c0_i32_1 = arith.constant 0 : i32
    return %c0_i32, %c0_i32_0 : i32, i32
  }
  func.func @transform_3(%arg0: i32) -> (i32, i32) {
    %c0_i32 = arith.constant 0 : i32
    %c0_i32_0 = arith.constant 0 : i32
    %c0_i32_1 = arith.constant 0 : i32
    return %c0_i32, %c0_i32_0 : i32, i32
  }
  func.func @transform_4(%arg0: i32) -> (i32, i32) {
    %c0_i32 = arith.constant 0 : i32
    %c0_i32_0 = arith.constant 0 : i32
    %c0_i32_1 = arith.constant 0 : i32
    return %c0_i32, %c0_i32_0 : i32, i32
  }
  func.func @transform_5(%arg0: i32) -> (i32, i32) {
    %c0_i32 = arith.constant 0 : i32
    %c0_i32_0 = arith.constant 0 : i32
    %c0_i32_1 = arith.constant 0 : i32
    return %c0_i32, %c0_i32_0 : i32, i32
  }
  func.func @transform_6(%arg0: i32) -> (i32, i32) {
    %c0_i32 = arith.constant 0 : i32
    %c0_i32_0 = arith.constant 0 : i32
    %c0_i32_1 = arith.constant 0 : i32
    return %c0_i32, %c0_i32_0 : i32, i32
  }
  func.func @transform_7(%arg0: i32) -> (i32, i32) {
    %c0_i32 = arith.constant 0 : i32
    %c0_i32_0 = arith.constant 0 : i32
    return %arg0, %c0_i32 : i32, i32
  }
}

</mosaic_0001>

<bundles_post_ra>
// kernel: tpu_custom_call.1
= control target key start
LH: loop header
LB: loop body
LE: loop exit
PB: predicated region body
PF: predicated region fallthrough
CT: control target
= control target key end

     0   :  { %13 = vsyncpa [#allocation4], 0  ;;  %s493_s0 = inlined_call_operand.hbm [shape: f32[8,16], index: 0, kind: input, shape index: {}]   ;;  %s494_s1 = inlined_call_operand.hbm [shape: f32[16,32], index: 1, kind: input, shape index: {}]   ;;  %s495_s2 = inlined_call_operand.vmem [shape: f32[1,32], index: 2, kind: input, shape index: {}]   ;;  %s496_s3 = inlined_call_operand.hbm [shape: f32[32,32], index: 3, kind: input, shape index: {}]   ;;  %s497_s4 = inlined_call_operand.vmem [shape: f32[1,32], index: 4, kind: input, shape index: {}]   ;;  %s498_s5 = inlined_call_operand.vmem [shape: f32[1,32], index: 5, kind: input, shape index: {}]   ;;  %s499_s6 = inlined_call_operand.<no memory space> [shape: f32[1,1], index: 6, kind: input, shape index: {}]   ;;  %s500_s7 = inlined_call_operand.vmem [shape: f32[8,1], index: 7, kind: output, shape index: {}]  }
   0x1   :  { %14 = vsyncpa [#allocation6], 0  ;;  %s388_s24 = smov [#allocation5]   ;;  %s318_s28 = scalar_lea.hbm %s494_s1, 256 }
   0x2   :  { %s30_s25 = sshll.u32 %s388_s24, 4  ;;  %p319_p0 = scmp.ne.s32.totalorder %s494_s1, %s318_s28  ;;  %s31_s25 = int_to_ptr.vmem [resolvable:$true] %s30_s25 }
   0x3   :  { %p322_p1 = scmp.lt.u32.totalorder %s318_s28, %s494_s1 }
   0x5   :  { %p324_p2 = pnand %p322_p1, %p319_p0 }
   0x7   :  { %327 = shalt.err (!%p324_p2)
}
   0x8   :  { %s328_s10 = scalar_lea.vmem %s31_s25, 256  ;;  %p333_p4 = scmp.lt.s32.totalorder %s31_s25, %s31_s25 }
   0x9   :  { %p329_p3 = scmp.ne.s32.totalorder %s31_s25, %s328_s10  ;;  %p334_p5 = scmp.lt.s32.totalorder %s328_s10, %s328_s10 }
   0xb   :  { %p335_p6 = por %p334_p5, %p333_p4 }
   0xd   :  { %p336_p7 = pnand %p335_p6, %p329_p3 }
   0xf   :  { %339 = shalt.err (!%p336_p7)
}
  0x10   :  { %s389_s11 = smov 128   ;;  %s390_s12 = smov 8  }
  0x11   :  { %36 = dma.hbm_to_vmem [thread:$0]  %s494_s1, 256, %s31_s25, [#allocation6], %s389_s11, %s389_s11, %s390_s12  }
  0x12   :  { %s391_s15 = smov [#allocation3]   ;;  %s392_s17 = smov [#allocation7]  }
  0x13   :  { %s21_s16 = sshll.u32 %s391_s15, 4  ;;  %s44_s18 = sshll.u32 %s392_s17, 4  ;;  %s22_s16 = int_to_ptr.vmem [resolvable:$true] %s21_s16  ;;  %s45_s18 = int_to_ptr.vmem [resolvable:$true] %s44_s18 }
  0x14   :  { %s340_s21 = scalar_lea.hbm %s493_s0, 128 }
  0x15   :  { %p341_p8 = scmp.ne.s32.totalorder %s493_s0, %s340_s21  ;;  %p344_p9 = scmp.lt.u32.totalorder %s340_s21, %s493_s0 }
  0x17   :  { %p346_p10 = pnand %p344_p9, %p341_p8 }
  0x19   :  { %349 = shalt.err (!%p346_p10)
}
  0x1a   :  { %s350_s1 = scalar_lea.vmem %s22_s16, 128  ;;  %p355_p12 = scmp.lt.s32.totalorder %s22_s16, %s22_s16 }
  0x1b   :  { %p351_p11 = scmp.ne.s32.totalorder %s22_s16, %s350_s1  ;;  %p356_p13 = scmp.lt.s32.totalorder %s350_s1, %s350_s1 }
  0x1d   :  { %p357_p0 = por %p356_p13, %p355_p12 }
  0x1f   :  { %p358_p1 = pnand %p357_p0, %p351_p11 }
  0x21   :  { %361 = shalt.err (!%p358_p1)
}
  0x22   :  { %24 = dma.hbm_to_vmem [thread:$0]  %s493_s0, 128, %s22_s16, [#allocation4]  }
  0x23   :  { %s362_s30 = scalar_lea.hbm %s496_s3, 512 }
  0x24   :  { %p363_p2 = scmp.ne.s32.totalorder %s496_s3, %s362_s30  ;;  %p366_p3 = scmp.lt.u32.totalorder %s362_s30, %s496_s3 }
  0x26   :  { %p368_p4 = pnand %p366_p3, %p363_p2 }
  0x28   :  { %371 = shalt.err (!%p368_p4)
}
  0x29   :  { %s372_s14 = scalar_lea.vmem %s45_s18, 512  ;;  %p377_p6 = scmp.lt.s32.totalorder %s45_s18, %s45_s18 }
  0x2a   :  { %p373_p5 = scmp.ne.s32.totalorder %s45_s18, %s372_s14  ;;  %p378_p7 = scmp.lt.s32.totalorder %s372_s14, %s372_s14 }
  0x2c   :  { %p379_p8 = por %p378_p7, %p377_p6 }
  0x2e   :  { %p380_p9 = pnand %p379_p8, %p373_p5 }
  0x30   :  { %383 = shalt.err (!%p380_p9)
}
  0x31   :  { %50 = dma.hbm_to_vmem [thread:$0]  %s496_s3, 512, %s45_s18, [#allocation6], %s389_s11, %s389_s11, %s390_s12  }
  0x32   :  { %384 = dma.done.wait [#allocation4], 128  }
  0x33   :  { %385 = vsyncadd [#allocation4], 4294967168 }
  0x34   :  { %386 = dma.done.wait [#allocation6], 768  }
  0x35   :  { %387 = vsyncadd [#allocation6], 4294966528  ;;  %v393_v0 = vmov 0.0|0.0   ;;  %vm394_vm0 = vmmov 0   ;;  %v395_v1 = vmov 0.0   ;;  %v67_v2 = vld [vmem:[#allocation5] sm:$0xff]  ;;  %v249_v25 = vstv %s499_s6 }
  0x36   :  { %297 = vmatprep.subr.bf16.mxu0 %v393_v0  ;;  %283 = vmatprep.mubr.msk.f32.mxu0 %vm394_vm0, %v395_v1  ;;  %v68_v3 = vld [vmem:[#allocation5 + $0x8] sm:$0xff]  ;;  %v151_v5 = vld [vmem:[#allocation7] sm:$0xff]  ;;  %v152_v6 = vld [vmem:[#allocation7 + $0x8] sm:$0xff]  ;;  %vm76_vm1 = vcmask 130048   ;;  %vm162_vm2 = vcmask 261120   ;;  %vm257_vm3 = vcmask 7168  }
  0x37   :  { %300 = vmatprep.subr.bf16.mxu1 %v393_v0  ;;  %294 = vmatprep.mubr.msk.f32.mxu1 %vm394_vm0, %v395_v1  ;;  %v298_v4 = vpack.c.bf16 %v68_v3, %v67_v2  ;;  %v301_v7 = vpack.c.bf16 %v152_v6, %v151_v5  ;;  %v66_v8 = vld [vmem:[#allocation3] sm:$0xff]  ;;  %v153_v9 = vld [vmem:[#allocation7 + $0x10] sm:$0xff]  ;;  %v154_v10 = vld [vmem:[#allocation7 + $0x18] sm:$0xff] }
  0x38   :  { %v304_v11 = vpack.c.bf16 %v154_v10, %v153_v9  ;;  %v265_v12 = vld [vmem:[%s495_s2] ss:$0 sm:$0xff] }
  0x39   :  { %299 = vmatpush3.bf16.msra.mxu0 %v298_v4  ;;  %302 = vmatpush3.bf16.msra.mxu1 %v301_v7  ;;  %v267_v17 = vld [vmem:[%s497_s4] ss:$0 sm:$0xff] }
  0x3a   :  { %303 = vmatprep.subr.bf16.mxu1 %v393_v0  ;;  %v269_v21 = vld [vmem:[%s498_s5] ss:$0 sm:$0xff] }
  0x3c   :  { %284 = vmatmul.mubr.msk.f32.vlgmr.msra.gmra.mrb[0].mxu0 %vm76_vm1, %v66_v8 }
  0x3d   :  { %305 = vmatpush3.bf16.msra.mxu1 %v304_v11 }
 0x10f   :  { %v146_v13 = vpop.f32.mrb[0].mxu0 }
 0x110   :  { %v147_v14 = vadd.f32 %v265_v12, %v146_v13  ;;  %v285_v15 = vpop.f32.mrb[1].mxu0 }
 0x112   :  { %v150_v16 = vmax.f32 %v147_v14, 0.0 }
 0x114   :  { %295 = vmatmul.mubr.msk.f32.vlgmr.msra.gmra.mrb[0].mxu1 %vm162_vm2, %v150_v16 }
 0x1e7   :  { %v232_v18 = vpop.f32.mrb[0].mxu1 }
 0x1e8   :  { %v233_v19 = vadd.f32 %v267_v17, %v232_v18  ;;  %v296_v20 = vpop.f32.mrb[1].mxu1 }
 0x1ea   :  { %v236_v22 = vmax.f32 %v233_v19, 0.0 }
 0x1ec   :  { %v244_v23 = vmul.f32 %v269_v21, %v236_v22 }
 0x1ee   :  { %v245_v24 = vsel %vm162_vm2, %v244_v23, 0.0 }
 0x1ef   :  { %246 = vadd.xlane.f32.xlu0 %v245_v24 }
 0x27c   :  { %v247_v26 = vpop.xlane.xlu0 %246 }
 0x27d   :  { %v250_v27 = vadd.f32 %v249_v25, %v247_v26 }
 0x27f   :  { %v270_v28 = vmul.f32 -1.442695, %v250_v27 }
 0x281   :  { %314 = vpow2.f32 %v270_v28 }
 0x28b   :  { %v315_v29 = vpop.eup %314 }
 0x28c   :  { %v254_v30 = vadd.f32 1.0, %v315_v29 }
 0x28e   :  { %316 = vrcp.f32 %v254_v30 }
 0x298   :  { %v317_v31 = vpop.eup %316 }
 0x299   :  { %258 = vst.msk [vmem:[%s500_s7] sm:$0xff] %vm257_vm3, %v317_v31 }
 0x29a   :  { %263 = vsyncpa [#allocation4], 1 }
 0x29b   :  { %264 = vsyncpa [#allocation6], 1 }

</bundles_post_ra>
